<compile_context>
chip_gen: v7x
topology: tpu7x:2x2x1
jax: 0.10.0
libtpu: 0.0.40
codegen_flags: <defaults>
</compile_context>

<pallas_src>
import jax
import jax.numpy as jnp
from jax.experimental import pallas as pl
from jax.experimental.pallas import tpu as pltpu

# Matches nn.LeakyReLU(True) in the reference module (slope == float(True) == 1.0).
NEG_SLOPE = 1.0


def _maybe_leaky(y):
    # Trace-time branch: slope == 1.0 -> identity, emit nothing.
    if NEG_SLOPE != 1.0:
        y = jnp.where(y >= 0.0, y, NEG_SLOPE * y)
    return y


def _decoder_kernel(u_ref, it_ref, w_ref, b_ref, uo_ref, io_ref):
    """Fused u_net + i_net in a single MXU pass.

    u_ref : [Mu, K]  (any float dtype)     it_ref: [Mi, K]
    w_ref : [K, 2N]  bf16   (u_w | i_w concatenated along N)
    b_ref : [1, 2N]  f32    (u_b | i_b)
    uo_ref: [Mu, N]  f32                   io_ref: [Mi, N]  f32
    """
    Mu = u_ref.shape[0]
    N = uo_ref.shape[1]

    # Stack rows in f32 (clean sublane-8 boundary for Mu/Mi multiples of 8),
    # then downcast once to bf16 so the MXU runs a native bf16 pass with f32
    # accumulation (preferred_element_type), instead of a decomposed f32
    # matmul.
    x = jnp.concatenate([u_ref[...].astype(jnp.float32),
                         it_ref[...].astype(jnp.float32)], axis=0)
    y = jnp.dot(x.astype(jnp.bfloat16), w_ref[...],
                preferred_element_type=jnp.float32)          # [Mu+Mi, 2N]

    # Keep only the two useful quadrants (u rows x u_w cols, i rows x i_w
    # cols); the cross terms rode along for free in the same MXU pass.
    # Bias add + (identity) activation in f32 on the VPU.
    yu = y[:Mu, :N] + b_ref[:, :N]
    yi = y[Mu:, N:] + b_ref[:, N:]
    uo_ref[...] = _maybe_leaky(yu).astype(uo_ref.dtype)
    io_ref[...] = _maybe_leaky(yi).astype(io_ref.dtype)


def decoder_forward(u, i_tensor, cat_w, cat_b):
    """One pallas_call computing both decoder linears in a single MXU pass.

    Shapes are tiny, so every operand is one full-array VMEM block (no grid,
    no pipelining machinery).  If batch/embed/feat grow, tile the row axis
    (marked "parallel" for megacore / v7x's 2 TCs), keep the [K, 2N] weight
    block resident (constant index_map, single-buffered) and budget tiles
    against v7x's 64 MiB VMEM (32 MiB scoped default), not v6e's 128 MiB.
    """
    Mu, K = u.shape
    Mi = i_tensor.shape[0]
    twoN = cat_w.shape[1]
    N = twoN // 2

    flops = 2 * (Mu + Mi) * K * twoN
    bytes_accessed = (u.size * u.dtype.itemsize
                      + i_tensor.size * i_tensor.dtype.itemsize
                      + cat_w.size * cat_w.dtype.itemsize
                      + cat_b.size * cat_b.dtype.itemsize
                      + (Mu + Mi) * N * 4)

    vmem = pl.BlockSpec(memory_space=pltpu.VMEM)
    return pl.pallas_call(
        _decoder_kernel,
        out_shape=(
            jax.ShapeDtypeStruct((Mu, N), jnp.float32),
            jax.ShapeDtypeStruct((Mi, N), jnp.float32),
        ),
        in_specs=[vmem, vmem, vmem, vmem],
        out_specs=(vmem, vmem),
        cost_estimate=pl.CostEstimate(flops=flops, transcendentals=0,
                                      bytes_accessed=bytes_accessed),
    )(u, i_tensor, cat_w, cat_b)


class DecoderPallas:
    """JAX/Pallas port of the PyTorch Decoder module."""

    def __init__(self, embed_size, feat_size, key):
        self.embed_size = int(embed_size)
        self.feat_size = int(feat_size)
        # Lane-dense outputs: pad the feature dim to a multiple of 128 once at
        # init; any de-pad slice is folded into the jitted forward.
        self.padded_feat = ((self.feat_size + 127) // 128) * 128
        pad = self.padded_feat - self.feat_size

        k1, k2, k3, k4 = jax.random.split(key, 4)
        bound = 1.0 / float(self.embed_size) ** 0.5

        def init_w(k):
            w = jax.random.uniform(k, (self.embed_size, self.feat_size),
                                   jnp.float32, -bound, bound)
            return jnp.pad(w, ((0, 0), (0, pad))) if pad else w

        def init_b(k):
            b = jax.random.uniform(k, (1, self.feat_size),
                                   jnp.float32, -bound, bound)
            return jnp.pad(b, ((0, 0), (0, pad))) if pad else b

        u_w, i_w = init_w(k1), init_w(k3)
        u_b, i_b = init_b(k2), init_b(k4)

        # Packed once at init: bf16 weights [K, 2N] (native MXU dtype, half
        # the weight DMA bytes), f32 biases [1, 2N] (bias add stays f32).
        self.cat_w = jnp.concatenate([u_w, i_w], axis=1).astype(jnp.bfloat16)
        self.cat_b = jnp.concatenate([u_b, i_b], axis=1).astype(jnp.float32)

        # Single jitted executable for the whole forward path (stack +
        # pallas_call + optional slice): the workload is dispatch-bound.
        self._forward = jax.jit(self._forward_impl)

    def _forward_impl(self, u, i_values):
        # i_values is either a tuple of [embed] arrays (stack fused under jit)
        # or an already stacked [num_items, embed] array.
        i_tensor = jnp.stack(i_values) if isinstance(i_values, tuple) else i_values
        u_out, i_out = decoder_forward(u, i_tensor, self.cat_w, self.cat_b)
        if self.padded_feat != self.feat_size:  # trace-time branch, fused under jit
            u_out = u_out[:, : self.feat_size]
            i_out = i_out[:, : self.feat_size]
        return u_out, i_out

    def __call__(self, u, i):
        # u: [batch_u, embed_size].
        # i: dict {key -> [embed_size] array} (stacked in key iteration order,
        # matching the torch code) OR a pre-stacked [num_items, embed] array.
        if isinstance(i, dict):
            i_values = tuple(i[k] for k in i.keys())
        else:
            i_values = i
        return self._forward(u, i_values)


if __name__ == "__main__":
    # Small deterministic example: embed=32, feat=128 (lane-dense), 8 users,
    # 8 items.
    embed_size = 32
    feat_size = 128
    batch_u = 8
    num_items = 8

    key = jax.random.PRNGKey(0)
    k_params, k_u, k_i = jax.random.split(key, 3)

    decoder = DecoderPallas(embed_size, feat_size, k_params)

    u = jax.random.normal(k_u, (batch_u, embed_size), jnp.float32)
    item_keys = jax.random.split(k_i, num_items)
    i = {f"item_{n}": jax.random.normal(item_keys[n], (embed_size,), jnp.float32)
         for n in range(num_items)}

    u_out, i_out = decoder(u, i)
    jax.block_until_ready((u_out, i_out))

    # Reference in plain JAX with the same bf16-stored weights (bf16 inputs,
    # f32 accumulate, f32 bias add, slope-1.0 leaky-relu == identity).
    Np = decoder.padded_feat
    u_w = decoder.cat_w[:, :Np].astype(jnp.float32)
    i_w = decoder.cat_w[:, Np:].astype(jnp.float32)
    u_b = decoder.cat_b[:, :Np]
    i_b = decoder.cat_b[:, Np:]

    def ref(x, w, b):
        y = x.astype(jnp.bfloat16).astype(jnp.float32) @ w + b
        return jnp.where(y >= 0.0, y, NEG_SLOPE * y)

    i_tensor = jnp.stack([i[k] for k in i.keys()])
    u_ref = ref(u, u_w, u_b)[:, :feat_size]
    i_ref = ref(i_tensor, i_w, i_b)[:, :feat_size]

    assert u_out.shape == (batch_u, feat_size)
    assert i_out.shape == (num_items, feat_size)
    assert jnp.allclose(u_out, u_ref, atol=1e-3, rtol=1e-3)
    assert jnp.allclose(i_out, i_ref, atol=1e-3, rtol=1e-3)

    print("KERNEL_OK")
</pallas_src>

<mosaic_0001>
module attributes {stable_mosaic.version = 11 : i64} {
  func.func @_decoder_kernel(%arg0: memref<8x32xf32, #tpu.memory_space<vmem>>, %arg1: memref<8x32xf32, #tpu.memory_space<vmem>>, %arg2: memref<32x256xbf16, #tpu.memory_space<vmem>>, %arg3: memref<1x256xf32, #tpu.memory_space<vmem>>, %arg4: memref<8x128xf32, #tpu.memory_space<vmem>>, %arg5: memref<8x128xf32, #tpu.memory_space<vmem>>) attributes {dimension_semantics = [], scalar_prefetch = 0 : i64, scratch_operands = 0 : i64, tpu.core_type = #tpu.core_type<tc>} {
    %c0 = arith.constant 0 : index
    %c0_0 = arith.constant 0 : index
    %0 = vector.load %arg0[%c0, %c0_0] : memref<8x32xf32, #tpu.memory_space<vmem>>, vector<8x32xf32>
    %c0_1 = arith.constant 0 : index
    %c0_2 = arith.constant 0 : index
    %1 = vector.load %arg1[%c0_1, %c0_2] : memref<8x32xf32, #tpu.memory_space<vmem>>, vector<8x32xf32>
    %2 = tpu.concatenate %0, %1 in 0 : vector<8x32xf32>, vector<8x32xf32> -> vector<16x32xf32>
    %3 = arith.truncf %2 : vector<16x32xf32> to vector<16x32xbf16>
    %c0_3 = arith.constant 0 : index
    %c0_4 = arith.constant 0 : index
    %4 = vector.load %arg2[%c0_3, %c0_4] : memref<32x256xbf16, #tpu.memory_space<vmem>>, vector<32x256xbf16>
    %cst = arith.constant dense<0.000000e+00> : vector<16x256xf32>
    %5 = tpu.matmul %3, %4, %cst {dimension_numbers = #tpu.dot_dimension_numbers<[1], [0], [0], [1], [0, 0, 1, 1], [], []>} : vector<16x32xbf16>, vector<32x256xbf16>, vector<16x256xf32> -> vector<16x256xf32>
    %6 = vector.extract_strided_slice %5 {offsets = [0, 0], sizes = [8, 128], strides = [1, 1]} : vector<16x256xf32> to vector<8x128xf32>
    %c0_5 = arith.constant 0 : index
    %c0_6 = arith.constant 0 : index
    %7 = vector.load %arg3[%c0_5, %c0_6] : memref<1x256xf32, #tpu.memory_space<vmem>>, vector<1x128xf32>
    %8 = vector.broadcast %7 : vector<1x128xf32> to vector<8x128xf32>
    %9 = arith.addf %6, %8 : vector<8x128xf32>
    %10 = vector.extract_strided_slice %5 {offsets = [8, 128], sizes = [8, 128], strides = [1, 1]} : vector<16x256xf32> to vector<8x128xf32>
    %c0_7 = arith.constant 0 : index
    %c128 = arith.constant 128 : index
    %11 = vector.load %arg3[%c0_7, %c128] : memref<1x256xf32, #tpu.memory_space<vmem>>, vector<1x128xf32>
    %12 = vector.broadcast %11 : vector<1x128xf32> to vector<8x128xf32>
    %13 = arith.addf %10, %12 : vector<8x128xf32>
    %c0_8 = arith.constant 0 : index
    %c0_9 = arith.constant 0 : index
    %14 = vector.load %arg4[%c0_8, %c0_9] : memref<8x128xf32, #tpu.memory_space<vmem>>, vector<8x128xf32>
    tpu.vector_store %arg4[%c0_8, %c0_9], %9 {strides = array<i32>} : memref<8x128xf32, #tpu.memory_space<vmem>>, vector<8x128xf32>,
    %c0_10 = arith.constant 0 : index
    %c0_11 = arith.constant 0 : index
    %15 = vector.load %arg5[%c0_10, %c0_11] : memref<8x128xf32, #tpu.memory_space<vmem>>, vector<8x128xf32>
    tpu.vector_store %arg5[%c0_10, %c0_11], %13 {strides = array<i32>} : memref<8x128xf32, #tpu.memory_space<vmem>>, vector<8x128xf32>,
    return
  }
}

</mosaic_0001>

<bundles_post_ra>
// kernel: _forward_impl.1
= control target key start
LH: loop header
LB: loop body
LE: loop exit
PB: predicated region body
PF: predicated region fallthrough
CT: control target
= control target key end

     0   :  { %11 = vsyncpa [#allocation3], 0  ;;  %v204_v2 = vmov 0   ;;  %s285_s0 = inlined_call_operand.vmem [shape: f32[8,32], index: 0, kind: input, shape index: {}]   ;;  %s286_s1 = inlined_call_operand.vmem [shape: f32[8,32], index: 1, kind: input, shape index: {}]   ;;  %s287_s2 = inlined_call_operand.vmem [shape: bf16[32,256], index: 2, kind: input, shape index: {}]   ;;  %s288_s3 = inlined_call_operand.vmem [shape: f32[1,256], index: 3, kind: input, shape index: {}]   ;;  %s289_s4 = inlined_call_operand.hbm [shape: f32[8,128], index: 4, kind: output, shape index: {0}]   ;;  %s290_s5 = inlined_call_operand.hbm [shape: f32[8,128], index: 5, kind: output, shape index: {1}]  }
   0x1   :  { %v150_v0 = vld [vmem:[%s287_s2 + $0x4] ss:$8 sps:$4 sm:$0xff]   ;;  %v152_v1 = vld [vmem:[%s287_s2] ss:$8 sps:$4 sm:$0xff]   ;;  %85 = vmatprep.mubr.bf16.mxu0 %v204_v2  ;;  %v153_v3 = vld [vmem:[%s287_s2 + $0x14] ss:$8 sps:$4 sm:$0xff]  }
   0x2   :  { %53 = vmatprep.subr.bf16.mxu0 %v150_v0  ;;  %v155_v4 = vld [vmem:[%s287_s2 + $0x10] ss:$8 sps:$4 sm:$0xff]   ;;  %v22_v5 = vld [vmem:[%s285_s0] sm:$0xff] }
   0x3   :  { %54 = vmatpush1.bf16.msra.mxu0 %v152_v1  ;;  %v23_v6 = vld [vmem:[%s286_s1] sm:$0xff] }
   0x4   :  { %12 = vsyncpa [#allocation5], 0  ;;  %55 = vmatprep.subr.bf16.mxu0 %v153_v3  ;;  %v24_v7 = vpack.c.bf16 %v23_v6, %v22_v5  ;;  %vm49_vm0 = vcmask 261120   ;;  %v145_v8 = vld [vmem:[%s288_s3] ss:$0 sm:$0xff]  ;;  %s205_s2 = smov [#allocation2]  }
   0x5   :  { %s118_s7 = sshll.u32 %s205_s2, 4  ;;  %s206_s8 = smov [#allocation4]   ;;  %v146_v12 = vld [vmem:[%s288_s3 + $0x1] ss:$0 sm:$0xff]  ;;  %s119_s7 = int_to_ptr.vmem [resolvable:$true] %s118_s7 }
   0x6   :  { %s128_s9 = sshll.u32 %s206_s8, 4  ;;  %s156_s1 = scalar_lea.vmem %s119_s7, 128  ;;  %s129_s9 = int_to_ptr.vmem [resolvable:$true] %s128_s9 }
   0x7   :  { %56 = vmatpush1.bf16.msra.mxu0 %v155_v4  ;;  %p157_p0 = scmp.ne.s32.totalorder %s119_s7, %s156_s1  ;;  %p161_p1 = scmp.lt.s32.totalorder %s119_s7, %s119_s7 }
   0x8   :  { %p162_p2 = scmp.lt.s32.totalorder %s156_s1, %s156_s1 }
   0xa   :  { %144 = vmatmul.mubr.msk.bf16.vlgmr.msra.gmra.mrb[0].mxu0 %vm49_vm0, %v24_v7  ;;  %p163_p3 = por %p162_p2, %p161_p1 }
   0xc   :  { %p164_p4 = pnand %p163_p3, %p157_p0 }
  0xdd   :  { %v87_v9 = vpop.f32.mrb[0].mxu0 }
  0xde   :  { %v101_v10 = vadd.f32 %v145_v8, %v87_v9  ;;  %v89_v11 = vpop.f32.mrb[1].mxu0 }
  0xdf   :  { %v90_v13 = vpop.f32.mrb[2].mxu0 }
  0xe0   :  { %110 = vst [vmem:[#allocation2] sm:$0xff] %v101_v10  ;;  %v91_v14 = vpop.f32.mrb[3].mxu0 }
  0xe1   :  { %v109_v15 = vadd.f32 %v146_v12, %v91_v14 }
  0xe2   :  { %167 = shalt.err (!%p164_p4)
}
  0xe3   :  { %s168_s13 = scalar_lea.hbm %s289_s4, 128 }
  0xe4   :  { %p169_p5 = scmp.ne.s32.totalorder %s289_s4, %s168_s13  ;;  %p172_p6 = scmp.lt.u32.totalorder %s168_s13, %s289_s4 }
  0xe6   :  { %p174_p7 = pnand %p172_p6, %p169_p5 }
  0xe8   :  { %177 = shalt.err (!%p174_p7)
}
  0xe9   :  { %121 = dma.vmem_to_hbm [thread:$0]  %s119_s7, 128, %s289_s4, [#allocation3]   ;;  %111 = vst [vmem:[#allocation4] sm:$0xff] %v109_v15 }
  0xea   :  { %s178_s19 = scalar_lea.vmem %s129_s9, 128  ;;  %p183_p9 = scmp.lt.s32.totalorder %s129_s9, %s129_s9 }
  0xeb   :  { %p179_p8 = scmp.ne.s32.totalorder %s129_s9, %s178_s19  ;;  %p184_p10 = scmp.lt.s32.totalorder %s178_s19, %s178_s19 }
  0xed   :  { %p185_p11 = por %p184_p10, %p183_p9 }
  0xef   :  { %p186_p12 = pnand %p185_p11, %p179_p8 }
  0xf1   :  { %189 = shalt.err (!%p186_p12)
}
  0xf2   :  { %s190_s22 = scalar_lea.hbm %s290_s5, 128 }
  0xf3   :  { %p191_p13 = scmp.ne.s32.totalorder %s290_s5, %s190_s22  ;;  %p194_p0 = scmp.lt.u32.totalorder %s190_s22, %s290_s5 }
  0xf5   :  { %p196_p1 = pnand %p194_p0, %p191_p13 }
  0xf7   :  { %199 = shalt.err (!%p196_p1)
}
  0xf8   :  { %131 = dma.vmem_to_hbm [thread:$0]  %s129_s9, 128, %s290_s5, [#allocation5]  }
  0xf9   :  { %200 = dma.done.wait [#allocation3], 128  }
  0xfa   :  { %201 = vsyncadd [#allocation3], 4294967168 }
  0xfb   :  { %202 = dma.done.wait [#allocation5], 128  }
  0xfc   :  { %203 = vsyncadd [#allocation5], 4294967168 }
  0xfd   :  { %138 = vsyncpa [#allocation3], 1 }
  0xfe   :  { %139 = vsyncpa [#allocation5], 1 }

</bundles_post_ra>
